<compile_context>
chip_gen: v5e
topology: v5e:2x2
jax: 0.10.0
libtpu: 0.0.40
codegen_flags: <defaults>
</compile_context>

<pallas_src>
import numpy as np
import jax
import jax.numpy as jnp
from jax.experimental import pallas as pl
from jax.experimental.pallas import tpu as pltpu


def _build_kernel(n_qubits, n_mid_layers, mm_dtype, unroll_limit=24):
    N = n_qubits
    Lm = n_mid_layers          # number of middle (non-final) layers actually run

    def kernel(x_ref, m_mid_ref, m_last_ref, out_ref, fac_ref):
        # x_ref:      (2N, TB)      qubit-major sublanes, batch on lanes (pre-normalized)
        # m_mid_ref:  (max(L-1,1), 16, 16)  folded per-layer matrices
        # m_last_ref: (8, 16)       folded final layer (row 0 only is nonzero)
        # out_ref:    (8, TB)       row 0 is the result
        # fac_ref:    (L, 16, TB)   VMEM scratch: hoisted |x_q><x_q| kron factors
        tb = out_ref.shape[1]
        half = tb // 2

        # Bit masks over the flattened two-qubit index f = 8i + 4k + 2j + l
        # (row = 2i + k, col = 2j + l of the 4x4 rho), shape (16, 1).
        fidx = jax.lax.broadcasted_iota(jnp.int32, (16, 1), 0)
        ibit = ((fidx >> 3) & 1).astype(jnp.float32)   # qubit-0 row bit
        kbit = ((fidx >> 2) & 1).astype(jnp.float32)   # qubit-1 row bit
        jbit = ((fidx >> 1) & 1).astype(jnp.float32)   # qubit-0 col bit
        lbit = (fidx & 1).astype(jnp.float32)          # qubit-1 col bit

        def outer16(q, bit_r, bit_c):
            # (16, tb) factor: |x_q><x_q| (x already normalized in the wrapper)
            # placed at the (bit_r, bit_c) slots of the flattened two-qubit rho.
            # Pure VPU: lerp between the two components selected by the 0/1 mask.
            x0 = x_ref[2 * q:2 * q + 1, :]             # (1, tb)
            x1 = x_ref[2 * q + 1:2 * q + 2, :]         # (1, tb)
            d = x1 - x0
            return (x0 + d * bit_r) * (x0 + d * bit_c)

        # ---- prologue: hoist every qubit factor off the serial layer chain ----
        for q in range(1, N):                          # N is small and static
            fac_ref[q - 1] = outer16(q, kbit, lbit)

        # ---- initial rho = kron(|x0><x0|, |x1><x1|), split into two lane-half
        #      chains whose matmul / VPU phases interleave across layers ----
        rho0 = outer16(0, ibit, jbit) * fac_ref[0]
        rho_a = rho0[:, :half]
        rho_b = rho0[:, half:]

        def layer(i, rho_a, rho_b):
            # One fused layer: Kraus superop + partial trace over qubit 0 +
            # re-expansion into the qubit-0 slot (all folded inside m_mid[i]),
            # then kron with the next qubit's (hoisted) outer product.
            m = m_mid_ref[i]                           # (16, 16)
            red_a = jnp.dot(m, rho_a.astype(mm_dtype),
                            preferred_element_type=jnp.float32)
            red_b = jnp.dot(m, rho_b.astype(mm_dtype),
                            preferred_element_type=jnp.float32)
            fac = fac_ref[i + 1]                       # (16, tb): qubit i+2
            return red_a * fac[:, :half], red_b * fac[:, half:]

        if Lm <= unroll_limit:
            # Full unroll: maximum LLO-scheduler visibility across layers/chains.
            for i in range(Lm):
                rho_a, rho_b = layer(i, rho_a, rho_b)
        else:
            rho_a, rho_b = jax.lax.fori_loop(
                0, Lm, lambda i, c: layer(i, *c), (rho_a, rho_b), unroll=4)

        # ---- final layer: superop + partial trace + [0,0] pick folded into row 0
        #      of the (8,16) last matrix; lane-aligned unmasked half-tile stores ----
        ml = m_last_ref[...]
        out_ref[:, :half] = jnp.dot(ml, rho_a.astype(mm_dtype),
                                    preferred_element_type=jnp.float32)
        out_ref[:, half:] = jnp.dot(ml, rho_b.astype(mm_dtype),
                                    preferred_element_type=jnp.float32)

    return kernel


def _round_up(a, m):
    return (a + m - 1) // m * m


def _tensorcores_per_chip():
    """2 for megacore chips (v4 / v5p / v7x), 1 for v5e / v6e.  Tiling hint only."""
    try:
        kind = jax.devices()[0].device_kind.lower()
    except Exception:
        return 1
    if "v7" in kind or "v5p" in kind or "v4" in kind:
        return 2
    return 1


def _choose_batch_tile(B, batch_tile, cores):
    """Pick a lane tile (multiple of 256: the dual-chain needs two >=128-lane halves)
    minimizing ceil(tiles/cores) * (tile_lanes + per-step overhead).  On 1-TC chips
    this keeps one big tile; on 2-TC chips it splits so both cores get work."""
    max_bt = max(256, (batch_tile // 256) * 256)
    overhead = 256                     # ~0.35 us per grid step expressed in lanes
    best = None
    for bt in range(256, max_bt + 1, 256):
        nt = -(-B // bt)
        cost = -(-nt // cores) * (bt + overhead)
        if best is None or cost < best[0] or (cost == best[0] and bt > best[1]):
            best = (cost, bt, nt)
    return best[1], best[2]


def mps_tpcp_forward(x, kraus, *, batch_tile=1024, matmul_dtype=jnp.float32):
    """x: (B, N, 2) float, kraus: (L=N-1, K*4, 4) stacked Stiefel points.
    Returns (B,) = partial_trace(rho_final)[0, 0], matching MPSTPCP.forward."""
    B, N, two = x.shape
    assert two == 2
    L, K4, act = kraus.shape
    assert L == N - 1 and act == 4 and K4 % 4 == 0
    K = K4 // 4
    hi = jax.lax.Precision.HIGHEST
    mm_dtype = jnp.dtype(matmul_dtype)

    # ---- fold all constant algebra into per-layer matrices (wrapper-side JAX) ----
    kl = kraus.reshape(L, K, 4, 4).astype(jnp.float32)
    # Flattened superoperator: rho_vec' = SL[l] @ rho_vec, with
    # SL[l][4i+j, 4p+q] = sum_k K[l,k,i,p] * K[l,k,j,q]   (real params => no conj).
    SL = jnp.einsum('lkip,lkjq->lijpq', kl, kl, precision=hi).reshape(L, 16, 16)

    # P: partial trace over qubit 0, then re-place the reduced 2x2 rho in the
    # qubit-0 slot of the flattened two-qubit index (column layout).
    P = np.zeros((16, 16), np.float32)
    for f in range(16):
        i, j = (f >> 3) & 1, (f >> 1) & 1
        P[f, 4 * i + j] = 1.0
        P[f, 10 + 4 * i + j] = 1.0
    P = jnp.asarray(P)

    if L > 1:
        M_mid = jnp.einsum('fg,lgh->lfh', P, SL[:-1], precision=hi)     # (L-1,16,16)
    else:
        M_mid = jnp.zeros((1, 16, 16), jnp.float32)                     # unused
    # Final layer: superop + partial trace + [0,0] element pick folded into row 0.
    final_row = SL[-1][0] + SL[-1][10]                                   # (16,)
    M_last = jnp.zeros((8, 16), jnp.float32).at[0].set(final_row)
    M_mid = M_mid.astype(mm_dtype)
    M_last = M_last.astype(mm_dtype)

    # ---- lane-dense batch tiling (v7x-aware split, one big tile on v5e/v6e) ----
    cores = _tensorcores_per_chip()
    bt, num_tiles = _choose_batch_tile(B, batch_tile, cores)
    Bp = num_tiles * bt

    # Normalize x in the wrapper (the module normalizes up front too) so the kernel
    # needs no divide / reciprocal; pad batch lanes with unit-norm rows (no NaNs).
    # TODO(synk): like the reference, an exactly-zero x row still yields NaN.
    xn = x.astype(jnp.float32)
    xn = xn / jnp.linalg.norm(xn, axis=-1, keepdims=True)
    if Bp != B:
        pad = jnp.full((Bp - B, N, 2), np.float32(np.sqrt(0.5)))
        xn = jnp.concatenate([xn, pad], axis=0)
    # (Bp, N, 2) -> (2N, Bp): qubit-major sublanes (dense), batch on lanes.
    # TODO(synk): for very large B this transpose is an extra HBM pass over x.
    x_t = jnp.transpose(xn, (1, 2, 0)).reshape(2 * N, Bp)

    kernel = _build_kernel(N, L - 1, mm_dtype)
    out = pl.pallas_call(
        kernel,
        out_shape=jax.ShapeDtypeStruct((8, Bp), jnp.float32),
        grid_spec=pltpu.PrefetchScalarGridSpec(
            num_scalar_prefetch=0,
            grid=(num_tiles,),
            in_specs=[
                pl.BlockSpec((2 * N, bt), lambda b: (0, b)),
                pl.BlockSpec((M_mid.shape[0], 16, 16), lambda b: (0, 0, 0)),
                pl.BlockSpec((8, 16), lambda b: (0, 0)),
            ],
            out_specs=pl.BlockSpec((8, bt), lambda b: (0, b)),
            scratch_shapes=[pltpu.VMEM((L, 16, bt), jnp.float32)],
        ),
        compiler_params=pltpu.CompilerParams(dimension_semantics=("parallel",)),
    )(x_t, M_mid, M_last)
    return out[0, :B]


def init_kraus_params(key, N, K, act_size=4):
    """Deterministic Stiefel init: QR of Gaussian (K*act, act) per layer -> (L, K*4, 4)."""
    L = N - 1
    keys = jax.random.split(key, L)
    params = []
    for l in range(L):
        Mg = jax.random.normal(keys[l], (K * act_size, act_size), dtype=jnp.float32)
        Q, _ = jnp.linalg.qr(Mg)
        params.append(Q)
    return jnp.stack(params)


def reference_forward(x, kraus):
    """Plain-JAX port of MPSTPCP.forward for verification."""
    B, N, _ = x.shape
    L = N - 1
    K = kraus.shape[1] // 4
    x = x / jnp.linalg.norm(x, axis=-1, keepdims=True)
    hi = jax.lax.Precision.HIGHEST

    def get_rho(v):
        return jnp.einsum('bi,bj->bij', v, v, precision=hi)

    def kron(r1, r2):
        return jnp.einsum('bij,bkl->bikjl', r1, r2, precision=hi).reshape(B, 4, 4)

    def partial0(rho):
        r = rho.reshape(B, 2, 2, 2, 2)
        return r[:, 0, :, 0, :] + r[:, 1, :, 1, :]

    rho = kron(get_rho(x[:, 0]), get_rho(x[:, 1]))
    for i in range(L):
        Kl = kraus[i].reshape(K, 4, 4)
        rho = jnp.einsum('kip,bpq,kjq->bij', Kl, rho, Kl, precision=hi)
        if i < L - 1:
            rho = kron(partial0(rho), get_rho(x[:, i + 2]))
    return partial0(rho)[:, 0, 0]


if __name__ == "__main__":
    key = jax.random.PRNGKey(0)
    configs = [
        dict(B=256, N=8, K=3),    # fully-unrolled layer path, exact single tile
        dict(B=48, N=12, K=2),    # batch padding (48 -> 256 lanes)
        dict(B=64, N=28, K=2),    # fori_loop layer path (26 mid layers > unroll limit)
    ]
    for cfg in configs:
        B, N, K = cfg["B"], cfg["N"], cfg["K"]
        kx, kp, key = jax.random.split(key, 3)
        x = jax.random.normal(kx, (B, N, 2), dtype=jnp.float32)
        kraus = init_kraus_params(kp, N, K)

        out = jax.block_until_ready(mps_tpcp_forward(x, kraus))
        ref = reference_forward(x, kraus)
        assert out.shape == (B,)
        if not np.allclose(np.asarray(out), np.asarray(ref), rtol=1e-2, atol=1e-3):
            raise AssertionError(
                f"mismatch for {cfg}:\n{np.asarray(out)}\nvs\n{np.asarray(ref)}")
    print("KERNEL_OK")
</pallas_src>

<mosaic_0001>
module attributes {stable_mosaic.version = 11 : i64} {
  func.func @kernel(%arg0: i32, %arg1: memref<16x256xf32, #tpu.memory_space<vmem>>, %arg2: memref<6x16x16xf32, #tpu.memory_space<vmem>>, %arg3: memref<8x16xf32, #tpu.memory_space<vmem>>, %arg4: memref<8x256xf32, #tpu.memory_space<vmem>>, %arg5: memref<7x16x256xf32, #tpu.memory_space<vmem>>) attributes {dimension_semantics = [#tpu.dimension_semantics<parallel>], iteration_bounds = array<i64: 1>, scalar_prefetch = 0 : i64, scratch_operands = 1 : i64, tpu.core_type = #tpu.core_type<tc>, window_params = [{transform_indices = @transform_0, window_bounds = array<i64: 16, 256>}, {pipeline_mode = #tpu.pipeline_mode<synchronous>, transform_indices = @transform_1, window_bounds = array<i64: 6, 16, 16>}, {pipeline_mode = #tpu.pipeline_mode<synchronous>, transform_indices = @transform_2, window_bounds = array<i64: 8, 16>}, {transform_indices = @transform_3, window_bounds = array<i64: 8, 256>}]} {
    %0 = tpu.iota {dimensions = array<i32: 0>} : vector<16x1xi32>
    %c3_i32 = arith.constant 3 : i32
    %1 = vector.broadcast %c3_i32 : i32 to vector<16x1xi32>
    %2 = arith.shrsi %0, %1 : vector<16x1xi32>
    %c1_i32 = arith.constant 1 : i32
    %3 = vector.broadcast %c1_i32 : i32 to vector<16x1xi32>
    %4 = arith.andi %2, %3 : vector<16x1xi32>
    %5 = arith.sitofp %4 : vector<16x1xi32> to vector<16x1xf32>
    %c2_i32 = arith.constant 2 : i32
    %6 = vector.broadcast %c2_i32 : i32 to vector<16x1xi32>
    %7 = arith.shrsi %0, %6 : vector<16x1xi32>
    %c1_i32_0 = arith.constant 1 : i32
    %8 = vector.broadcast %c1_i32_0 : i32 to vector<16x1xi32>
    %9 = arith.andi %7, %8 : vector<16x1xi32>
    %10 = arith.sitofp %9 : vector<16x1xi32> to vector<16x1xf32>
    %c1_i32_1 = arith.constant 1 : i32
    %11 = vector.broadcast %c1_i32_1 : i32 to vector<16x1xi32>
    %12 = arith.shrsi %0, %11 : vector<16x1xi32>
    %c1_i32_2 = arith.constant 1 : i32
    %13 = vector.broadcast %c1_i32_2 : i32 to vector<16x1xi32>
    %14 = arith.andi %12, %13 : vector<16x1xi32>
    %15 = arith.sitofp %14 : vector<16x1xi32> to vector<16x1xf32>
    %c1_i32_3 = arith.constant 1 : i32
    %16 = vector.broadcast %c1_i32_3 : i32 to vector<16x1xi32>
    %17 = arith.andi %0, %16 : vector<16x1xi32>
    %18 = arith.sitofp %17 : vector<16x1xi32> to vector<16x1xf32>
    %c2 = arith.constant 2 : index
    %c0 = arith.constant 0 : index
    %19 = vector.load %arg1[%c2, %c0] : memref<16x256xf32, #tpu.memory_space<vmem>>, vector<1x256xf32>
    %c3 = arith.constant 3 : index
    %c0_4 = arith.constant 0 : index
    %20 = vector.load %arg1[%c3, %c0_4] : memref<16x256xf32, #tpu.memory_space<vmem>>, vector<1x256xf32>
    %21 = arith.subf %20, %19 : vector<1x256xf32>
    %22 = vector.broadcast %21 : vector<1x256xf32> to vector<16x256xf32>
    %23 = vector.broadcast %10 : vector<16x1xf32> to vector<16x256xf32>
    %24 = arith.mulf %22, %23 : vector<16x256xf32>
    %25 = vector.broadcast %19 : vector<1x256xf32> to vector<16x256xf32>
    %26 = arith.addf %25, %24 : vector<16x256xf32>
    %27 = vector.broadcast %21 : vector<1x256xf32> to vector<16x256xf32>
    %28 = vector.broadcast %18 : vector<16x1xf32> to vector<16x256xf32>
    %29 = arith.mulf %27, %28 : vector<16x256xf32>
    %30 = vector.broadcast %19 : vector<1x256xf32> to vector<16x256xf32>
    %31 = arith.addf %30, %29 : vector<16x256xf32>
    %32 = arith.mulf %26, %31 : vector<16x256xf32>
    %c0_5 = arith.constant 0 : index
    %c0_6 = arith.constant 0 : index
    %c0_7 = arith.constant 0 : index
    %33 = vector.load %arg5[%c0_5, %c0_6, %c0_7] : memref<7x16x256xf32, #tpu.memory_space<vmem>>, vector<1x16x256xf32>
    %34 = vector.shape_cast %33 : vector<1x16x256xf32> to vector<16x256xf32>
    %35 = vector.shape_cast %32 : vector<16x256xf32> to vector<1x16x256xf32>
    tpu.vector_store %arg5[%c0_5, %c0_6, %c0_7], %35 {strides = array<i32>} : memref<7x16x256xf32, #tpu.memory_space<vmem>>, vector<1x16x256xf32>,
    %c4 = arith.constant 4 : index
    %c0_8 = arith.constant 0 : index
    %36 = vector.load %arg1[%c4, %c0_8] : memref<16x256xf32, #tpu.memory_space<vmem>>, vector<1x256xf32>
    %c5 = arith.constant 5 : index
    %c0_9 = arith.constant 0 : index
    %37 = vector.load %arg1[%c5, %c0_9] : memref<16x256xf32, #tpu.memory_space<vmem>>, vector<1x256xf32>
    %38 = arith.subf %37, %36 : vector<1x256xf32>
    %39 = vector.broadcast %38 : vector<1x256xf32> to vector<16x256xf32>
    %40 = vector.broadcast %10 : vector<16x1xf32> to vector<16x256xf32>
    %41 = arith.mulf %39, %40 : vector<16x256xf32>
    %42 = vector.broadcast %36 : vector<1x256xf32> to vector<16x256xf32>
    %43 = arith.addf %42, %41 : vector<16x256xf32>
    %44 = vector.broadcast %38 : vector<1x256xf32> to vector<16x256xf32>
    %45 = vector.broadcast %18 : vector<16x1xf32> to vector<16x256xf32>
    %46 = arith.mulf %44, %45 : vector<16x256xf32>
    %47 = vector.broadcast %36 : vector<1x256xf32> to vector<16x256xf32>
    %48 = arith.addf %47, %46 : vector<16x256xf32>
    %49 = arith.mulf %43, %48 : vector<16x256xf32>
    %c1 = arith.constant 1 : index
    %c0_10 = arith.constant 0 : index
    %c0_11 = arith.constant 0 : index
    %50 = vector.load %arg5[%c1, %c0_10, %c0_11] : memref<7x16x256xf32, #tpu.memory_space<vmem>>, vector<1x16x256xf32>
    %51 = vector.shape_cast %50 : vector<1x16x256xf32> to vector<16x256xf32>
    %52 = vector.shape_cast %49 : vector<16x256xf32> to vector<1x16x256xf32>
    tpu.vector_store %arg5[%c1, %c0_10, %c0_11], %52 {strides = array<i32>} : memref<7x16x256xf32, #tpu.memory_space<vmem>>, vector<1x16x256xf32>,
    %c6 = arith.constant 6 : index
    %c0_12 = arith.constant 0 : index
    %53 = vector.load %arg1[%c6, %c0_12] : memref<16x256xf32, #tpu.memory_space<vmem>>, vector<1x256xf32>
    %c7 = arith.constant 7 : index
    %c0_13 = arith.constant 0 : index
    %54 = vector.load %arg1[%c7, %c0_13] : memref<16x256xf32, #tpu.memory_space<vmem>>, vector<1x256xf32>
    %55 = arith.subf %54, %53 : vector<1x256xf32>
    %56 = vector.broadcast %55 : vector<1x256xf32> to vector<16x256xf32>
    %57 = vector.broadcast %10 : vector<16x1xf32> to vector<16x256xf32>
    %58 = arith.mulf %56, %57 : vector<16x256xf32>
    %59 = vector.broadcast %53 : vector<1x256xf32> to vector<16x256xf32>
    %60 = arith.addf %59, %58 : vector<16x256xf32>
    %61 = vector.broadcast %55 : vector<1x256xf32> to vector<16x256xf32>
    %62 = vector.broadcast %18 : vector<16x1xf32> to vector<16x256xf32>
    %63 = arith.mulf %61, %62 : vector<16x256xf32>
    %64 = vector.broadcast %53 : vector<1x256xf32> to vector<16x256xf32>
    %65 = arith.addf %64, %63 : vector<16x256xf32>
    %66 = arith.mulf %60, %65 : vector<16x256xf32>
    %c2_14 = arith.constant 2 : index
    %c0_15 = arith.constant 0 : index
    %c0_16 = arith.constant 0 : index
    %67 = vector.load %arg5[%c2_14, %c0_15, %c0_16] : memref<7x16x256xf32, #tpu.memory_space<vmem>>, vector<1x16x256xf32>
    %68 = vector.shape_cast %67 : vector<1x16x256xf32> to vector<16x256xf32>
    %69 = vector.shape_cast %66 : vector<16x256xf32> to vector<1x16x256xf32>
    tpu.vector_store %arg5[%c2_14, %c0_15, %c0_16], %69 {strides = array<i32>} : memref<7x16x256xf32, #tpu.memory_space<vmem>>, vector<1x16x256xf32>,
    %c8 = arith.constant 8 : index
    %c0_17 = arith.constant 0 : index
    %70 = vector.load %arg1[%c8, %c0_17] : memref<16x256xf32, #tpu.memory_space<vmem>>, vector<1x256xf32>
    %c9 = arith.constant 9 : index
    %c0_18 = arith.constant 0 : index
    %71 = vector.load %arg1[%c9, %c0_18] : memref<16x256xf32, #tpu.memory_space<vmem>>, vector<1x256xf32>
    %72 = arith.subf %71, %70 : vector<1x256xf32>
    %73 = vector.broadcast %72 : vector<1x256xf32> to vector<16x256xf32>
    %74 = vector.broadcast %10 : vector<16x1xf32> to vector<16x256xf32>
    %75 = arith.mulf %73, %74 : vector<16x256xf32>
    %76 = vector.broadcast %70 : vector<1x256xf32> to vector<16x256xf32>
    %77 = arith.addf %76, %75 : vector<16x256xf32>
    %78 = vector.broadcast %72 : vector<1x256xf32> to vector<16x256xf32>
    %79 = vector.broadcast %18 : vector<16x1xf32> to vector<16x256xf32>
    %80 = arith.mulf %78, %79 : vector<16x256xf32>
    %81 = vector.broadcast %70 : vector<1x256xf32> to vector<16x256xf32>
    %82 = arith.addf %81, %80 : vector<16x256xf32>
    %83 = arith.mulf %77, %82 : vector<16x256xf32>
    %c3_19 = arith.constant 3 : index
    %c0_20 = arith.constant 0 : index
    %c0_21 = arith.constant 0 : index
    %84 = vector.load %arg5[%c3_19, %c0_20, %c0_21] : memref<7x16x256xf32, #tpu.memory_space<vmem>>, vector<1x16x256xf32>
    %85 = vector.shape_cast %84 : vector<1x16x256xf32> to vector<16x256xf32>
    %86 = vector.shape_cast %83 : vector<16x256xf32> to vector<1x16x256xf32>
    tpu.vector_store %arg5[%c3_19, %c0_20, %c0_21], %86 {strides = array<i32>} : memref<7x16x256xf32, #tpu.memory_space<vmem>>, vector<1x16x256xf32>,
    %c10 = arith.constant 10 : index
    %c0_22 = arith.constant 0 : index
    %87 = vector.load %arg1[%c10, %c0_22] : memref<16x256xf32, #tpu.memory_space<vmem>>, vector<1x256xf32>
    %c11 = arith.constant 11 : index
    %c0_23 = arith.constant 0 : index
    %88 = vector.load %arg1[%c11, %c0_23] : memref<16x256xf32, #tpu.memory_space<vmem>>, vector<1x256xf32>
    %89 = arith.subf %88, %87 : vector<1x256xf32>
    %90 = vector.broadcast %89 : vector<1x256xf32> to vector<16x256xf32>
    %91 = vector.broadcast %10 : vector<16x1xf32> to vector<16x256xf32>
    %92 = arith.mulf %90, %91 : vector<16x256xf32>
    %93 = vector.broadcast %87 : vector<1x256xf32> to vector<16x256xf32>
    %94 = arith.addf %93, %92 : vector<16x256xf32>
    %95 = vector.broadcast %89 : vector<1x256xf32> to vector<16x256xf32>
    %96 = vector.broadcast %18 : vector<16x1xf32> to vector<16x256xf32>
    %97 = arith.mulf %95, %96 : vector<16x256xf32>
    %98 = vector.broadcast %87 : vector<1x256xf32> to vector<16x256xf32>
    %99 = arith.addf %98, %97 : vector<16x256xf32>
    %100 = arith.mulf %94, %99 : vector<16x256xf32>
    %c4_24 = arith.constant 4 : index
    %c0_25 = arith.constant 0 : index
    %c0_26 = arith.constant 0 : index
    %101 = vector.load %arg5[%c4_24, %c0_25, %c0_26] : memref<7x16x256xf32, #tpu.memory_space<vmem>>, vector<1x16x256xf32>
    %102 = vector.shape_cast %101 : vector<1x16x256xf32> to vector<16x256xf32>
    %103 = vector.shape_cast %100 : vector<16x256xf32> to vector<1x16x256xf32>
    tpu.vector_store %arg5[%c4_24, %c0_25, %c0_26], %103 {strides = array<i32>} : memref<7x16x256xf32, #tpu.memory_space<vmem>>, vector<1x16x256xf32>,
    %c12 = arith.constant 12 : index
    %c0_27 = arith.constant 0 : index
    %104 = vector.load %arg1[%c12, %c0_27] : memref<16x256xf32, #tpu.memory_space<vmem>>, vector<1x256xf32>
    %c13 = arith.constant 13 : index
    %c0_28 = arith.constant 0 : index
    %105 = vector.load %arg1[%c13, %c0_28] : memref<16x256xf32, #tpu.memory_space<vmem>>, vector<1x256xf32>
    %106 = arith.subf %105, %104 : vector<1x256xf32>
    %107 = vector.broadcast %106 : vector<1x256xf32> to vector<16x256xf32>
    %108 = vector.broadcast %10 : vector<16x1xf32> to vector<16x256xf32>
    %109 = arith.mulf %107, %108 : vector<16x256xf32>
    %110 = vector.broadcast %104 : vector<1x256xf32> to vector<16x256xf32>
    %111 = arith.addf %110, %109 : vector<16x256xf32>
    %112 = vector.broadcast %106 : vector<1x256xf32> to vector<16x256xf32>
    %113 = vector.broadcast %18 : vector<16x1xf32> to vector<16x256xf32>
    %114 = arith.mulf %112, %113 : vector<16x256xf32>
    %115 = vector.broadcast %104 : vector<1x256xf32> to vector<16x256xf32>
    %116 = arith.addf %115, %114 : vector<16x256xf32>
    %117 = arith.mulf %111, %116 : vector<16x256xf32>
    %c5_29 = arith.constant 5 : index
    %c0_30 = arith.constant 0 : index
    %c0_31 = arith.constant 0 : index
    %118 = vector.load %arg5[%c5_29, %c0_30, %c0_31] : memref<7x16x256xf32, #tpu.memory_space<vmem>>, vector<1x16x256xf32>
    %119 = vector.shape_cast %118 : vector<1x16x256xf32> to vector<16x256xf32>
    %120 = vector.shape_cast %117 : vector<16x256xf32> to vector<1x16x256xf32>
    tpu.vector_store %arg5[%c5_29, %c0_30, %c0_31], %120 {strides = array<i32>} : memref<7x16x256xf32, #tpu.memory_space<vmem>>, vector<1x16x256xf32>,
    %c14 = arith.constant 14 : index
    %c0_32 = arith.constant 0 : index
    %121 = vector.load %arg1[%c14, %c0_32] : memref<16x256xf32, #tpu.memory_space<vmem>>, vector<1x256xf32>
    %c15 = arith.constant 15 : index
    %c0_33 = arith.constant 0 : index
    %122 = vector.load %arg1[%c15, %c0_33] : memref<16x256xf32, #tpu.memory_space<vmem>>, vector<1x256xf32>
    %123 = arith.subf %122, %121 : vector<1x256xf32>
    %124 = vector.broadcast %123 : vector<1x256xf32> to vector<16x256xf32>
    %125 = vector.broadcast %10 : vector<16x1xf32> to vector<16x256xf32>
    %126 = arith.mulf %124, %125 : vector<16x256xf32>
    %127 = vector.broadcast %121 : vector<1x256xf32> to vector<16x256xf32>
    %128 = arith.addf %127, %126 : vector<16x256xf32>
    %129 = vector.broadcast %123 : vector<1x256xf32> to vector<16x256xf32>
    %130 = vector.broadcast %18 : vector<16x1xf32> to vector<16x256xf32>
    %131 = arith.mulf %129, %130 : vector<16x256xf32>
    %132 = vector.broadcast %121 : vector<1x256xf32> to vector<16x256xf32>
    %133 = arith.addf %132, %131 : vector<16x256xf32>
    %134 = arith.mulf %128, %133 : vector<16x256xf32>
    %c6_34 = arith.constant 6 : index
    %c0_35 = arith.constant 0 : index
    %c0_36 = arith.constant 0 : index
    %135 = vector.load %arg5[%c6_34, %c0_35, %c0_36] : memref<7x16x256xf32, #tpu.memory_space<vmem>>, vector<1x16x256xf32>
    %136 = vector.shape_cast %135 : vector<1x16x256xf32> to vector<16x256xf32>
    %137 = vector.shape_cast %134 : vector<16x256xf32> to vector<1x16x256xf32>
    tpu.vector_store %arg5[%c6_34, %c0_35, %c0_36], %137 {strides = array<i32>} : memref<7x16x256xf32, #tpu.memory_space<vmem>>, vector<1x16x256xf32>,
    %c0_37 = arith.constant 0 : index
    %c0_38 = arith.constant 0 : index
    %138 = vector.load %arg1[%c0_37, %c0_38] : memref<16x256xf32, #tpu.memory_space<vmem>>, vector<1x256xf32>
    %c1_39 = arith.constant 1 : index
    %c0_40 = arith.constant 0 : index
    %139 = vector.load %arg1[%c1_39, %c0_40] : memref<16x256xf32, #tpu.memory_space<vmem>>, vector<1x256xf32>
    %140 = arith.subf %139, %138 : vector<1x256xf32>
    %141 = vector.broadcast %140 : vector<1x256xf32> to vector<16x256xf32>
    %142 = vector.broadcast %5 : vector<16x1xf32> to vector<16x256xf32>
    %143 = arith.mulf %141, %142 : vector<16x256xf32>
    %144 = vector.broadcast %138 : vector<1x256xf32> to vector<16x256xf32>
    %145 = arith.addf %144, %143 : vector<16x256xf32>
    %146 = vector.broadcast %140 : vector<1x256xf32> to vector<16x256xf32>
    %147 = vector.broadcast %15 : vector<16x1xf32> to vector<16x256xf32>
    %148 = arith.mulf %146, %147 : vector<16x256xf32>
    %149 = vector.broadcast %138 : vector<1x256xf32> to vector<16x256xf32>
    %150 = arith.addf %149, %148 : vector<16x256xf32>
    %151 = arith.mulf %145, %150 : vector<16x256xf32>
    %c0_41 = arith.constant 0 : index
    %c0_42 = arith.constant 0 : index
    %c0_43 = arith.constant 0 : index
    %152 = vector.load %arg5[%c0_41, %c0_42, %c0_43] : memref<7x16x256xf32, #tpu.memory_space<vmem>>, vector<1x16x256xf32>
    %153 = vector.shape_cast %152 : vector<1x16x256xf32> to vector<16x256xf32>
    %154 = arith.mulf %151, %153 : vector<16x256xf32>
    %155 = vector.extract_strided_slice %154 {offsets = [0, 0], sizes = [16, 128], strides = [1, 1]} : vector<16x256xf32> to vector<16x128xf32>
    %156 = vector.extract_strided_slice %154 {offsets = [0, 128], sizes = [16, 128], strides = [1, 1]} : vector<16x256xf32> to vector<16x128xf32>
    %c0_44 = arith.constant 0 : index
    %c0_45 = arith.constant 0 : index
    %c0_46 = arith.constant 0 : index
    %157 = vector.load %arg2[%c0_44, %c0_45, %c0_46] : memref<6x16x16xf32, #tpu.memory_space<vmem>>, vector<1x16x16xf32>
    %158 = vector.shape_cast %157 : vector<1x16x16xf32> to vector<16x16xf32>
    %cst = arith.constant dense<0.000000e+00> : vector<16x128xf32>
    %159 = tpu.matmul %158, %155, %cst {dimension_numbers = #tpu.dot_dimension_numbers<[1], [0], [0], [1], [0, 0, 1, 1], [], []>} : vector<16x16xf32>, vector<16x128xf32>, vector<16x128xf32> -> vector<16x128xf32>
    %cst_47 = arith.constant dense<0.000000e+00> : vector<16x128xf32>
    %160 = tpu.matmul %158, %156, %cst_47 {dimension_numbers = #tpu.dot_dimension_numbers<[1], [0], [0], [1], [0, 0, 1, 1], [], []>} : vector<16x16xf32>, vector<16x128xf32>, vector<16x128xf32> -> vector<16x128xf32>
    %c1_48 = arith.constant 1 : index
    %c0_49 = arith.constant 0 : index
    %c0_50 = arith.constant 0 : index
    %161 = vector.load %arg5[%c1_48, %c0_49, %c0_50] : memref<7x16x256xf32, #tpu.memory_space<vmem>>, vector<1x16x256xf32>
    %162 = vector.shape_cast %161 : vector<1x16x256xf32> to vector<16x256xf32>
    %163 = vector.extract_strided_slice %162 {offsets = [0, 0], sizes = [16, 128], strides = [1, 1]} : vector<16x256xf32> to vector<16x128xf32>
    %164 = arith.mulf %159, %163 : vector<16x128xf32>
    %165 = vector.extract_strided_slice %162 {offsets = [0, 128], sizes = [16, 128], strides = [1, 1]} : vector<16x256xf32> to vector<16x128xf32>
    %166 = arith.mulf %160, %165 : vector<16x128xf32>
    %c1_51 = arith.constant 1 : index
    %c0_52 = arith.constant 0 : index
    %c0_53 = arith.constant 0 : index
    %167 = vector.load %arg2[%c1_51, %c0_52, %c0_53] : memref<6x16x16xf32, #tpu.memory_space<vmem>>, vector<1x16x16xf32>
    %168 = vector.shape_cast %167 : vector<1x16x16xf32> to vector<16x16xf32>
    %cst_54 = arith.constant dense<0.000000e+00> : vector<16x128xf32>
    %169 = tpu.matmul %168, %164, %cst_54 {dimension_numbers = #tpu.dot_dimension_numbers<[1], [0], [0], [1], [0, 0, 1, 1], [], []>} : vector<16x16xf32>, vector<16x128xf32>, vector<16x128xf32> -> vector<16x128xf32>
    %cst_55 = arith.constant dense<0.000000e+00> : vector<16x128xf32>
    %170 = tpu.matmul %168, %166, %cst_55 {dimension_numbers = #tpu.dot_dimension_numbers<[1], [0], [0], [1], [0, 0, 1, 1], [], []>} : vector<16x16xf32>, vector<16x128xf32>, vector<16x128xf32> -> vector<16x128xf32>
    %c2_56 = arith.constant 2 : index
    %c0_57 = arith.constant 0 : index
    %c0_58 = arith.constant 0 : index
    %171 = vector.load %arg5[%c2_56, %c0_57, %c0_58] : memref<7x16x256xf32, #tpu.memory_space<vmem>>, vector<1x16x256xf32>
    %172 = vector.shape_cast %171 : vector<1x16x256xf32> to vector<16x256xf32>
    %173 = vector.extract_strided_slice %172 {offsets = [0, 0], sizes = [16, 128], strides = [1, 1]} : vector<16x256xf32> to vector<16x128xf32>
    %174 = arith.mulf %169, %173 : vector<16x128xf32>
    %175 = vector.extract_strided_slice %172 {offsets = [0, 128], sizes = [16, 128], strides = [1, 1]} : vector<16x256xf32> to vector<16x128xf32>
    %176 = arith.mulf %170, %175 : vector<16x128xf32>
    %c2_59 = arith.constant 2 : index
    %c0_60 = arith.constant 0 : index
    %c0_61 = arith.constant 0 : index
    %177 = vector.load %arg2[%c2_59, %c0_60, %c0_61] : memref<6x16x16xf32, #tpu.memory_space<vmem>>, vector<1x16x16xf32>
    %178 = vector.shape_cast %177 : vector<1x16x16xf32> to vector<16x16xf32>
    %cst_62 = arith.constant dense<0.000000e+00> : vector<16x128xf32>
    %179 = tpu.matmul %178, %174, %cst_62 {dimension_numbers = #tpu.dot_dimension_numbers<[1], [0], [0], [1], [0, 0, 1, 1], [], []>} : vector<16x16xf32>, vector<16x128xf32>, vector<16x128xf32> -> vector<16x128xf32>
    %cst_63 = arith.constant dense<0.000000e+00> : vector<16x128xf32>
    %180 = tpu.matmul %178, %176, %cst_63 {dimension_numbers = #tpu.dot_dimension_numbers<[1], [0], [0], [1], [0, 0, 1, 1], [], []>} : vector<16x16xf32>, vector<16x128xf32>, vector<16x128xf32> -> vector<16x128xf32>
    %c3_64 = arith.constant 3 : index
    %c0_65 = arith.constant 0 : index
    %c0_66 = arith.constant 0 : index
    %181 = vector.load %arg5[%c3_64, %c0_65, %c0_66] : memref<7x16x256xf32, #tpu.memory_space<vmem>>, vector<1x16x256xf32>
    %182 = vector.shape_cast %181 : vector<1x16x256xf32> to vector<16x256xf32>
    %183 = vector.extract_strided_slice %182 {offsets = [0, 0], sizes = [16, 128], strides = [1, 1]} : vector<16x256xf32> to vector<16x128xf32>
    %184 = arith.mulf %179, %183 : vector<16x128xf32>
    %185 = vector.extract_strided_slice %182 {offsets = [0, 128], sizes = [16, 128], strides = [1, 1]} : vector<16x256xf32> to vector<16x128xf32>
    %186 = arith.mulf %180, %185 : vector<16x128xf32>
    %c3_67 = arith.constant 3 : index
    %c0_68 = arith.constant 0 : index
    %c0_69 = arith.constant 0 : index
    %187 = vector.load %arg2[%c3_67, %c0_68, %c0_69] : memref<6x16x16xf32, #tpu.memory_space<vmem>>, vector<1x16x16xf32>
    %188 = vector.shape_cast %187 : vector<1x16x16xf32> to vector<16x16xf32>
    %cst_70 = arith.constant dense<0.000000e+00> : vector<16x128xf32>
    %189 = tpu.matmul %188, %184, %cst_70 {dimension_numbers = #tpu.dot_dimension_numbers<[1], [0], [0], [1], [0, 0, 1, 1], [], []>} : vector<16x16xf32>, vector<16x128xf32>, vector<16x128xf32> -> vector<16x128xf32>
    %cst_71 = arith.constant dense<0.000000e+00> : vector<16x128xf32>
    %190 = tpu.matmul %188, %186, %cst_71 {dimension_numbers = #tpu.dot_dimension_numbers<[1], [0], [0], [1], [0, 0, 1, 1], [], []>} : vector<16x16xf32>, vector<16x128xf32>, vector<16x128xf32> -> vector<16x128xf32>
    %c4_72 = arith.constant 4 : index
    %c0_73 = arith.constant 0 : index
    %c0_74 = arith.constant 0 : index
    %191 = vector.load %arg5[%c4_72, %c0_73, %c0_74] : memref<7x16x256xf32, #tpu.memory_space<vmem>>, vector<1x16x256xf32>
    %192 = vector.shape_cast %191 : vector<1x16x256xf32> to vector<16x256xf32>
    %193 = vector.extract_strided_slice %192 {offsets = [0, 0], sizes = [16, 128], strides = [1, 1]} : vector<16x256xf32> to vector<16x128xf32>
    %194 = arith.mulf %189, %193 : vector<16x128xf32>
    %195 = vector.extract_strided_slice %192 {offsets = [0, 128], sizes = [16, 128], strides = [1, 1]} : vector<16x256xf32> to vector<16x128xf32>
    %196 = arith.mulf %190, %195 : vector<16x128xf32>
    %c4_75 = arith.constant 4 : index
    %c0_76 = arith.constant 0 : index
    %c0_77 = arith.constant 0 : index
    %197 = vector.load %arg2[%c4_75, %c0_76, %c0_77] : memref<6x16x16xf32, #tpu.memory_space<vmem>>, vector<1x16x16xf32>
    %198 = vector.shape_cast %197 : vector<1x16x16xf32> to vector<16x16xf32>
    %cst_78 = arith.constant dense<0.000000e+00> : vector<16x128xf32>
    %199 = tpu.matmul %198, %194, %cst_78 {dimension_numbers = #tpu.dot_dimension_numbers<[1], [0], [0], [1], [0, 0, 1, 1], [], []>} : vector<16x16xf32>, vector<16x128xf32>, vector<16x128xf32> -> vector<16x128xf32>
    %cst_79 = arith.constant dense<0.000000e+00> : vector<16x128xf32>
    %200 = tpu.matmul %198, %196, %cst_79 {dimension_numbers = #tpu.dot_dimension_numbers<[1], [0], [0], [1], [0, 0, 1, 1], [], []>} : vector<16x16xf32>, vector<16x128xf32>, vector<16x128xf32> -> vector<16x128xf32>
    %c5_80 = arith.constant 5 : index
    %c0_81 = arith.constant 0 : index
    %c0_82 = arith.constant 0 : index
    %201 = vector.load %arg5[%c5_80, %c0_81, %c0_82] : memref<7x16x256xf32, #tpu.memory_space<vmem>>, vector<1x16x256xf32>
    %202 = vector.shape_cast %201 : vector<1x16x256xf32> to vector<16x256xf32>
    %203 = vector.extract_strided_slice %202 {offsets = [0, 0], sizes = [16, 128], strides = [1, 1]} : vector<16x256xf32> to vector<16x128xf32>
    %204 = arith.mulf %199, %203 : vector<16x128xf32>
    %205 = vector.extract_strided_slice %202 {offsets = [0, 128], sizes = [16, 128], strides = [1, 1]} : vector<16x256xf32> to vector<16x128xf32>
    %206 = arith.mulf %200, %205 : vector<16x128xf32>
    %c5_83 = arith.constant 5 : index
    %c0_84 = arith.constant 0 : index
    %c0_85 = arith.constant 0 : index
    %207 = vector.load %arg2[%c5_83, %c0_84, %c0_85] : memref<6x16x16xf32, #tpu.memory_space<vmem>>, vector<1x16x16xf32>
    %208 = vector.shape_cast %207 : vector<1x16x16xf32> to vector<16x16xf32>
    %cst_86 = arith.constant dense<0.000000e+00> : vector<16x128xf32>
    %209 = tpu.matmul %208, %204, %cst_86 {dimension_numbers = #tpu.dot_dimension_numbers<[1], [0], [0], [1], [0, 0, 1, 1], [], []>} : vector<16x16xf32>, vector<16x128xf32>, vector<16x128xf32> -> vector<16x128xf32>
    %cst_87 = arith.constant dense<0.000000e+00> : vector<16x128xf32>
    %210 = tpu.matmul %208, %206, %cst_87 {dimension_numbers = #tpu.dot_dimension_numbers<[1], [0], [0], [1], [0, 0, 1, 1], [], []>} : vector<16x16xf32>, vector<16x128xf32>, vector<16x128xf32> -> vector<16x128xf32>
    %c6_88 = arith.constant 6 : index
    %c0_89 = arith.constant 0 : index
    %c0_90 = arith.constant 0 : index
    %211 = vector.load %arg5[%c6_88, %c0_89, %c0_90] : memref<7x16x256xf32, #tpu.memory_space<vmem>>, vector<1x16x256xf32>
    %212 = vector.shape_cast %211 : vector<1x16x256xf32> to vector<16x256xf32>
    %213 = vector.extract_strided_slice %212 {offsets = [0, 0], sizes = [16, 128], strides = [1, 1]} : vector<16x256xf32> to vector<16x128xf32>
    %214 = arith.mulf %209, %213 : vector<16x128xf32>
    %215 = vector.extract_strided_slice %212 {offsets = [0, 128], sizes = [16, 128], strides = [1, 1]} : vector<16x256xf32> to vector<16x128xf32>
    %216 = arith.mulf %210, %215 : vector<16x128xf32>
    %c0_91 = arith.constant 0 : index
    %c0_92 = arith.constant 0 : index
    %217 = vector.load %arg3[%c0_91, %c0_92] : memref<8x16xf32, #tpu.memory_space<vmem>>, vector<8x16xf32>
    %cst_93 = arith.constant dense<0.000000e+00> : vector<8x128xf32>
    %218 = tpu.matmul %217, %214, %cst_93 {dimension_numbers = #tpu.dot_dimension_numbers<[1], [0], [0], [1], [0, 0, 1, 1], [], []>} : vector<8x16xf32>, vector<16x128xf32>, vector<8x128xf32> -> vector<8x128xf32>
    %c0_94 = arith.constant 0 : index
    %c0_95 = arith.constant 0 : index
    %219 = vector.load %arg4[%c0_94, %c0_95] : memref<8x256xf32, #tpu.memory_space<vmem>>, vector<8x128xf32>
    tpu.vector_store %arg4[%c0_94, %c0_95], %218 {strides = array<i32>} : memref<8x256xf32, #tpu.memory_space<vmem>>, vector<8x128xf32>,
    %cst_96 = arith.constant dense<0.000000e+00> : vector<8x128xf32>
    %220 = tpu.matmul %217, %216, %cst_96 {dimension_numbers = #tpu.dot_dimension_numbers<[1], [0], [0], [1], [0, 0, 1, 1], [], []>} : vector<8x16xf32>, vector<16x128xf32>, vector<8x128xf32> -> vector<8x128xf32>
    %c0_97 = arith.constant 0 : index
    %c128 = arith.constant 128 : index
    %221 = vector.load %arg4[%c0_97, %c128] : memref<8x256xf32, #tpu.memory_space<vmem>>, vector<8x128xf32>
    tpu.vector_store %arg4[%c0_97, %c128], %220 {strides = array<i32>} : memref<8x256xf32, #tpu.memory_space<vmem>>, vector<8x128xf32>,
    return
  }
  func.func @transform_0(%arg0: i32) -> (i32, i32) {
    %c0_i32 = arith.constant 0 : i32
    %c0_i32_0 = arith.constant 0 : i32
    return %c0_i32, %arg0 : i32, i32
  }
  func.func @transform_1(%arg0: i32) -> (i32, i32, i32) {
    %c0_i32 = arith.constant 0 : i32
    %c0_i32_0 = arith.constant 0 : i32
    %c0_i32_1 = arith.constant 0 : i32
    %c0_i32_2 = arith.constant 0 : i32
    return %c0_i32, %c0_i32_0, %c0_i32_1 : i32, i32, i32
  }
  func.func @transform_2(%arg0: i32) -> (i32, i32) {
    %c0_i32 = arith.constant 0 : i32
    %c0_i32_0 = arith.constant 0 : i32
    %c0_i32_1 = arith.constant 0 : i32
    return %c0_i32, %c0_i32_0 : i32, i32
  }
  func.func @transform_3(%arg0: i32) -> (i32, i32) {
    %c0_i32 = arith.constant 0 : i32
    %c0_i32_0 = arith.constant 0 : i32
    return %c0_i32, %arg0 : i32, i32
  }
}

</mosaic_0001>

<bundles_post_ra>
// kernel: tpu_custom_call.1
= control target key start
LH: loop header
LB: loop body
LE: loop exit
PB: predicated region body
PF: predicated region fallthrough
CT: control target
= control target key end

     0   :  { %8 = vsyncpa [#allocation4], 0  ;;  %s1117_s0 = inlined_call_operand.hbm [shape: f32[16,256], index: 0, kind: input, shape index: {}]   ;;  %s1118_s1 = inlined_call_operand.hbm [shape: f32[6,16,16], index: 1, kind: input, shape index: {}]   ;;  %s1119_s2 = inlined_call_operand.hbm [shape: f32[8,16], index: 2, kind: input, shape index: {}]   ;;  %s1120_s3 = inlined_call_operand.hbm [shape: f32[8,256], index: 3, kind: output, shape index: {}]  }
   0x1   :  { %9 = vsyncpa [#allocation7], 0  ;;  %s28_s14 = sshll.u32 %s1118_s1, 4  ;;  %s29_s14 = int_to_ptr.hbm [resolvable:$true] %s28_s14 }
   0x2   :  { %10 = vsyncpa [#allocation5], 0  ;;  %s984_s15 = smov [#allocation6]   ;;  %s15_s19 = sshll.u32 %s1117_s0, 4  ;;  %s16_s19 = int_to_ptr.hbm [resolvable:$true] %s15_s19 }
   0x3   :  { %s30_s16 = sshll.u32 %s984_s15, 4  ;;  %s985_s20 = smov 128   ;;  %s31_s16 = int_to_ptr.vmem [resolvable:$true] %s30_s16 }
   0x4   :  { %s986_s21 = smov 8   ;;  %s987_s22 = smov [#allocation3]  }
   0x5   :  { %36 = dma.hbm_to_vmem [thread:$0]  %s29_s14, 1536, %s31_s16, [#allocation7], %s985_s20, %s985_s20, %s986_s21  }
   0x6   :  { %s17_s23 = sshll.u32 %s987_s22, 4  ;;  %s988_s24 = smov 256   ;;  %s18_s23 = int_to_ptr.vmem [resolvable:$true] %s17_s23 }
   0x7   :  { %s989_s25 = smov 16   ;;  %s42_s27 = sshll.u32 %s1119_s2, 4  ;;  %s43_s27 = int_to_ptr.hbm [resolvable:$true] %s42_s27 }
   0x8   :  { %23 = dma.hbm_to_vmem [thread:$0]  %s16_s19, 512, %s18_s23, [#allocation4], %s988_s24, %s988_s24, %s989_s25  }
   0x9   :  { %s990_s28 = smov [#allocation8]  }
   0xa   :  { %s44_s29 = sshll.u32 %s990_s28, 4  ;;  %s45_s29 = int_to_ptr.vmem [resolvable:$true] %s44_s29 }
   0xb   :  { %47 = dma.hbm_to_vmem [thread:$0]  %s43_s27, 128, %s45_s29, [#allocation7]  }
   0xc   :  { %978 = dma.done.wait [#allocation4], 512  }
   0xd   :  { %979 = vsyncadd [#allocation4], 4294966784 }
   0xe   :  { %980 = dma.done.wait [#allocation7], 1664  }
   0xf   :  { %981 = vsyncadd [#allocation7], 4294965632  ;;  %v60_v0 = vlaneseq  ;;  %v86_v12 = vld [vmem:[#allocation3 + $0x2] ss:$8 sm:$0x3]  ;;  %vm408_vm0 = vcmask 130048  }
  0x10   :  { %v88_v18 = vld [vmem:[#allocation3 + $0x3] ss:$8 sm:$0x3]  ;;  %v364_v23 = vld [vmem:[#allocation3] ss:$8 sm:$0x3] }
  0x11   :  { %v61_v1 = vshrl.u32 %v60_v0, 7  ;;  %v89_v22 = vsub.f32 %v88_v18, %v86_v12  ;;  %v100_v26 = vperm.slane %v86_v12, 0  ;;  %v366_v27 = vld [vmem:[#allocation3 + $0x1] ss:$8 sm:$0x3]  ;;  %v101_v28 = vperm.slane %v86_v12, 1 }
  0x12   :  { %v367_v31 = vsub.f32 %v366_v27, %v364_v23  ;;  %v378_v33 = vperm.slane %v364_v23, 0  ;;  %v379_v34 = vperm.slane %v364_v23, 1  ;;  %v407_v23 = vld [vmem:[#allocation6 + $0x8] sm:$0xff]  ;;  %s991_s0 = smov [#allocation9]   ;;  %s837_s5 = sshll.u32 %s1120_s3, 4  ;;  %s838_s5 = int_to_ptr.hbm [resolvable:$true] %s837_s5 }
  0x13   :  { %v62_v2 = vadd.s32 8, %v61_v1  ;;  %v69_v3 = vshra.s32 %v61_v1, 2  ;;  %v63_v4 = vshra.s32 %v61_v1, 3  ;;  %v81_v5 = vand.u32 1, %v61_v1  ;;  %s835_s2 = sshll.u32 %s991_s0, 4  ;;  %s836_s2 = int_to_ptr.vmem [resolvable:$true] %s835_s2 }
  0x14   :  { %v75_v6 = vshra.s32 %v61_v1, 1  ;;  %v91_v30 = vperm.slane %v89_v22, 0  ;;  %v92_v32 = vperm.slane %v89_v22, 1  ;;  %v369_v39 = vperm.slane %v367_v31, 0 }
  0x15   :  { %v64_v7 = vshra.s32 %v62_v2, 3  ;;  %v70_v8 = vshra.s32 %v62_v2, 2  ;;  %v71_v9 = vand.u32 1, %v69_v3  ;;  %v76_v10 = vshra.s32 %v62_v2, 1 }
  0x16   :  { %v82_v11 = vand.u32 1, %v62_v2  ;;  %v65_v13 = vand.u32 1, %v63_v4  ;;  %v1021_v14 = vand.u32 1, %v75_v6  ;;  %v1025_v20 = vcvt.s32.f32 %v81_v5 }
  0x17   :  { %v66_v15 = vand.u32 1, %v64_v7  ;;  %v72_v16 = vand.u32 1, %v70_v8  ;;  %v78_v17 = vand.u32 1, %v76_v10  ;;  %v1023_v19 = vcvt.s32.f32 %v71_v9 }
  0x18   :  { %v1027_v21 = vcvt.s32.f32 %v82_v11  ;;  %v67_v35 = vcvt.s32.f32 %v65_v13  ;;  %v79_v36 = vcvt.s32.f32 %v1021_v14  ;;  %v370_v42 = vperm.slane %v367_v31, 1 }
  0x19   :  { %v68_v24 = vcvt.s32.f32 %v66_v15  ;;  %v1029_v25 = vcvt.s32.f32 %v72_v16  ;;  %v80_v29 = vcvt.s32.f32 %v78_v17  ;;  %v95_v43 = vmul.f32 %v91_v30, %v1023_v19  ;;  %v406_v17 = vld [vmem:[#allocation6] sm:$0xff] }
  0x1a   :  { %v110_v38 = vmul.f32 %v91_v30, %v1027_v21  ;;  %v111_v41 = vmul.f32 %v92_v32, %v1027_v21  ;;  %v108_v44 = vmul.f32 %v91_v30, %v1025_v20  ;;  %v373_v62 = vmul.f32 %v369_v39, %v67_v35 }
  0x1b   :  { %v97_v37 = vmul.f32 %v91_v30, %v1029_v25  ;;  %v98_v40 = vmul.f32 %v92_v32, %v1029_v25  ;;  %v375_v47 = vmul.f32 %v369_v39, %v68_v24  ;;  %v388_v48 = vmul.f32 %v369_v39, %v80_v29 }
  0x1c   :  { %v114_v46 = vadd.f32 %v110_v38, %v100_v26  ;;  %v115_v50 = vadd.f32 %v111_v41, %v101_v28  ;;  %v376_v51 = vmul.f32 %v370_v42, %v68_v24  ;;  %v389_v52 = vmul.f32 %v370_v42, %v80_v29  ;;  %v125_v24 = vld [vmem:[#allocation3 + $0x4] ss:$8 sm:$0x3] }
  0x1d   :  { %v106_v45 = vadd.f32 %v100_v26, %v97_v37  ;;  %v107_v49 = vadd.f32 %v101_v28, %v98_v40  ;;  %v384_v54 = vadd.f32 %v378_v33, %v375_v47  ;;  %v392_v55 = vadd.f32 %v388_v48, %v378_v33 }
  0x1e   :  { %v104_v56 = vadd.f32 %v100_v26, %v95_v43  ;;  %v385_v58 = vadd.f32 %v379_v34, %v376_v51  ;;  %v393_v59 = vadd.f32 %v389_v52, %v379_v34  ;;  %v112_v60 = vadd.f32 %v108_v44, %v100_v26  ;;  %v127_v26 = vld [vmem:[#allocation3 + $0x5] ss:$8 sm:$0x3] }
  0x1f   :  { %v118_v53 = vmul.f32 %v114_v46, %v106_v45  ;;  %v119_v57 = vmul.f32 %v115_v50, %v107_v49  ;;  %v396_v61 = vmul.f32 %v392_v55, %v384_v54  ;;  %v386_v63 = vmul.f32 %v369_v39, %v79_v36 }
  0x20   :  { %v96_v0 = vmul.f32 %v92_v32, %v1023_v19  ;;  %v397_v1 = vmul.f32 %v393_v59, %v385_v58  ;;  %v116_v2 = vmul.f32 %v112_v60, %v104_v56  ;;  %v109_v3 = vmul.f32 %v92_v32, %v1025_v20  ;;  %v470_v58 = vld [vmem:[#allocation6 + $0x10] sm:$0xff] }
  0x21   :  { %v374_v4 = vmul.f32 %v370_v42, %v67_v35  ;;  %v404_v5 = vmul.f32 %v396_v61, %v118_v53  ;;  %v382_v6 = vadd.f32 %v378_v33, %v373_v62  ;;  %v390_v7 = vadd.f32 %v386_v63, %v378_v33  ;;  %v471_v61 = vld [vmem:[#allocation6 + $0x18] sm:$0xff]  ;;  %v165_v62 = vld [vmem:[#allocation3 + $0x6] ss:$8 sm:$0x3] }
  0x22   :  { %v105_v8 = vadd.f32 %v101_v28, %v96_v0  ;;  %v405_v9 = vmul.f32 %v397_v1, %v119_v57  ;;  %v113_v10 = vadd.f32 %v109_v3, %v101_v28  ;;  %v387_v12 = vmul.f32 %v370_v42, %v79_v36  ;;  %v167_v63 = vld [vmem:[#allocation3 + $0x7] ss:$8 sm:$0x3] }
  0x23   :  { %v383_v11 = vadd.f32 %v379_v34, %v374_v4  ;;  %429 = vmatpush.msra.mxu0 %v404_v5  ;;  %v394_v13 = vmul.f32 %v390_v7, %v382_v6  ;;  %v128_v27 = vsub.f32 %v127_v26, %v125_v24  ;;  %v139_v33 = vperm.slane %v125_v24, 0 }
  0x24   :  { %452 = vmatpush.msra.mxu1 %v405_v9  ;;  %v117_v14 = vmul.f32 %v113_v10, %v105_v8  ;;  %v391_v15 = vadd.f32 %v387_v12, %v379_v34  ;;  %v140_v41 = vperm.slane %v125_v24, 1  ;;  %v168_v0 = vsub.f32 %v167_v63, %v165_v62 }
  0x25   :  { %v402_v16 = vmul.f32 %v394_v13, %v116_v2  ;;  %v130_v28 = vperm.slane %v128_v27, 0  ;;  %v131_v31 = vperm.slane %v128_v27, 1  ;;  %v179_v6 = vperm.slane %v165_v62, 0 }
  0x26   :  { %v395_v18 = vmul.f32 %v391_v15, %v383_v11  ;;  %v170_v1 = vperm.slane %v168_v0, 0  ;;  %v171_v4 = vperm.slane %v168_v0, 1 }
  0x27   :  { %430 = vmatpush.msra.mxu0 %v402_v16  ;;  %v136_v29 = vmul.f32 %v130_v28, %v1029_v25  ;;  %v149_v30 = vmul.f32 %v130_v28, %v1027_v21  ;;  %v134_v32 = vmul.f32 %v130_v28, %v1023_v19  ;;  %v147_v34 = vmul.f32 %v130_v28, %v1025_v20 }
  0x28   :  { %v403_v22 = vmul.f32 %v395_v18, %v117_v14  ;;  %848 = vmatmul.msk.f32.vlgmr.msra.gmra.mxu0 %vm408_vm0, %v406_v17  ;;  %v137_v36 = vmul.f32 %v131_v31, %v1029_v25  ;;  %v150_v37 = vmul.f32 %v131_v31, %v1027_v21  ;;  %v135_v40 = vmul.f32 %v131_v31, %v1023_v19 }
  0x29   :  { %v145_v38 = vadd.f32 %v139_v33, %v136_v29  ;;  %v153_v39 = vadd.f32 %v149_v30, %v139_v33  ;;  %v148_v42 = vmul.f32 %v131_v31, %v1025_v20  ;;  %v143_v43 = vadd.f32 %v139_v33, %v134_v32 }
  0x2a   :  { %453 = vmatpush.msra.mxu1 %v403_v22  ;;  %v151_v44 = vadd.f32 %v147_v34, %v139_v33  ;;  %v146_v46 = vadd.f32 %v140_v41, %v137_v36  ;;  %v154_v47 = vadd.f32 %v150_v37, %v140_v41  ;;  %v144_v49 = vadd.f32 %v140_v41, %v135_v40  ;;  %v207_v40 = vld [vmem:[#allocation3 + $0x11] ss:$8 sm:$0x3] }
  0x2b   :  { %850 = vmatmul.msk.f32.vlgmr.msra.gmra.mxu1 %vm408_vm0, %v406_v17  ;;  %v157_v48 = vmul.f32 %v153_v39, %v145_v38  ;;  %v152_v50 = vadd.f32 %v148_v42, %v140_v41  ;;  %v176_v2 = vmul.f32 %v170_v1, %v1029_v25  ;;  %v189_v3 = vmul.f32 %v170_v1, %v1027_v21  ;;  %v534_v38 = vld [vmem:[#allocation6 + $0x28] sm:$0xff]  ;;  %v205_v39 = vld [vmem:[#allocation3 + $0x10] ss:$8 sm:$0x3] }
  0x2c   :  { %v155_v51 = vmul.f32 %v151_v44, %v143_v43  ;;  %v158_v53 = vmul.f32 %v154_v47, %v146_v46  ;;  %v174_v5 = vmul.f32 %v170_v1, %v1023_v19  ;;  %v187_v7 = vmul.f32 %v170_v1, %v1025_v20 }
  0x2d   :  { %v156_v55 = vmul.f32 %v152_v50, %v144_v49  ;;  %v177_v9 = vmul.f32 %v171_v4, %v1029_v25  ;;  %v190_v10 = vmul.f32 %v171_v4, %v1027_v21  ;;  %v185_v11 = vadd.f32 %v179_v6, %v176_v2 }
  0x2e   :  { %v193_v12 = vadd.f32 %v189_v3, %v179_v6  ;;  %v175_v13 = vmul.f32 %v171_v4, %v1023_v19  ;;  %v180_v14 = vperm.slane %v165_v62, 1  ;;  %v188_v15 = vmul.f32 %v171_v4, %v1025_v20 }
  0x2f   :  { %v183_v16 = vadd.f32 %v179_v6, %v174_v5  ;;  %v191_v17 = vadd.f32 %v187_v7, %v179_v6  ;;  %v208_v41 = vsub.f32 %v207_v40, %v205_v39  ;;  %v219_v47 = vperm.slane %v205_v39, 0 }
  0x30   :  { %849 = vmatmul.msk.f32.gmra.mxu0 %vm408_vm0, %v407_v23  ;;  %v186_v22 = vadd.f32 %v180_v14, %v177_v9  ;;  %v197_v24 = vmul.f32 %v193_v12, %v185_v11  ;;  %v184_v26 = vadd.f32 %v180_v14, %v175_v13  ;;  %v192_v27 = vadd.f32 %v188_v15, %v180_v14  ;;  %v597_v11 = vld [vmem:[#allocation6 + $0x38] sm:$0xff] }
  0x31   :  { %v195_v28 = vmul.f32 %v191_v17, %v183_v16  ;;  %v210_v42 = vperm.slane %v208_v41, 0  ;;  %v245_v12 = vld [vmem:[#allocation3 + $0x12] ss:$8 sm:$0x3] }
  0x32   :  { %v196_v32 = vmul.f32 %v192_v27, %v184_v26  ;;  %v247_v13 = vld [vmem:[#allocation3 + $0x13] ss:$8 sm:$0x3] }
  0x33   :  { %851 = vmatmul.msk.f32.gmra.mxu1 %vm408_vm0, %v407_v23  ;;  %v194_v23 = vadd.f32 %v190_v10, %v180_v14  ;;  %v216_v43 = vmul.f32 %v210_v42, %v1029_v25  ;;  %v229_v44 = vmul.f32 %v210_v42, %v1027_v21  ;;  %v214_v46 = vmul.f32 %v210_v42, %v1023_v19 }
  0x34   :  { %v248_v14 = vsub.f32 %v247_v13, %v245_v12 }
  0x35   :  { %v198_v30 = vmul.f32 %v194_v23, %v186_v22  ;;  %v259_v23 = vperm.slane %v245_v12, 0 }
  0x36   :  { %v250_v15 = vperm.slane %v248_v14, 0 }
  0x38   :  { %v256_v16 = vmul.f32 %v250_v15, %v1029_v25  ;;  %v269_v17 = vmul.f32 %v250_v15, %v1027_v21  ;;  %v254_v22 = vmul.f32 %v250_v15, %v1023_v19 }
  0xa5   :  { %v432_v35 = vpop.f32.mrf.mxu0 }
  0xa6   :  { %v465_v56 = vmul.f32 %v432_v35, %v155_v51  ;;  %v533_v35 = vld [vmem:[#allocation6 + $0x20] sm:$0xff] }
  0xa8   :  { %v455_v45 = vpop.f32.mrf.mxu1 }
  0xa9   :  { %v467_v60 = vmul.f32 %v455_v45, %v156_v55  ;;  %v211_v45 = vperm.slane %v208_v41, 1  ;;  %v220_v55 = vperm.slane %v205_v39, 1 }
  0xab   :  { %v217_v50 = vmul.f32 %v211_v45, %v1029_v25  ;;  %v230_v51 = vmul.f32 %v211_v45, %v1027_v21 }
  0xad   :  { %v435_v52 = vpop.f32.mrf.mxu0 }
  0xae   :  { %v466_v54 = vmul.f32 %v435_v52, %v157_v48  ;;  %v227_v48 = vmul.f32 %v210_v42, %v1025_v20  ;;  %v225_v52 = vadd.f32 %v219_v47, %v216_v43 }
  0xb0   :  { %v458_v57 = vpop.f32.mrf.mxu1  ;;  %492 = vmatpush.msra.mxu2 %v466_v54  ;;  %v215_v54 = vmul.f32 %v211_v45, %v1023_v19 }
  0xb1   :  { %v468_v59 = vmul.f32 %v458_v57, %v158_v53  ;;  %v233_v53 = vadd.f32 %v229_v44, %v219_v47  ;;  %v223_v57 = vadd.f32 %v219_v47, %v214_v46 }
  0xb2   :  { %493 = vmatpush.msra.mxu2 %v465_v56  ;;  %v228_v56 = vmul.f32 %v211_v45, %v1025_v20  ;;  %v224_v63 = vadd.f32 %v220_v55, %v215_v54  ;;  %v287_v54 = vld [vmem:[#allocation3 + $0x15] ss:$8 sm:$0x3] }
  0xb3   :  { %515 = vmatpush.msra.mxu3 %v468_v59  ;;  %852 = vmatmul.msk.f32.vlgmr.msra.gmra.mxu2 %vm408_vm0, %v470_v58  ;;  %v237_v62 = vmul.f32 %v233_v53, %v225_v52  ;;  %v660_v52 = vld [vmem:[#allocation6 + $0x48] sm:$0xff]  ;;  %v285_v53 = vld [vmem:[#allocation3 + $0x14] ss:$8 sm:$0x3] }
  0xb4   :  { %v232_v0 = vadd.f32 %v228_v56, %v220_v55 }
  0xb5   :  { %516 = vmatpush.msra.mxu3 %v467_v60  ;;  %v226_v60 = vadd.f32 %v220_v55, %v217_v50 }
  0xb6   :  { %854 = vmatmul.msk.f32.vlgmr.msra.gmra.mxu3 %vm408_vm0, %v470_v58  ;;  %v231_v58 = vadd.f32 %v227_v48, %v219_v47  ;;  %v236_v5 = vmul.f32 %v232_v0, %v224_v63 }
  0xb8   :  { %v235_v1 = vmul.f32 %v231_v58, %v223_v57 }
  0xbb   :  { %853 = vmatmul.msk.f32.gmra.mxu2 %vm408_vm0, %v471_v61 }
  0xbe   :  { %855 = vmatmul.msk.f32.gmra.mxu3 %vm408_vm0, %v471_v61  ;;  %v234_v61 = vadd.f32 %v230_v51, %v220_v55  ;;  %v288_v55 = vsub.f32 %v287_v54, %v285_v53 }
  0xc0   :  { %v238_v3 = vmul.f32 %v234_v61, %v226_v60  ;;  %v290_v56 = vperm.slane %v288_v55, 0  ;;  %v299_v61 = vperm.slane %v285_v53, 0 }
  0xc2   :  { %v296_v57 = vmul.f32 %v290_v56, %v1029_v25  ;;  %v309_v58 = vmul.f32 %v290_v56, %v1027_v21  ;;  %v294_v60 = vmul.f32 %v290_v56, %v1023_v19 }
 0x136   :  { %v495_v8 = vpop.f32.mrf.mxu2 }
 0x137   :  { %v528_v33 = vmul.f32 %v495_v8, %v195_v28  ;;  %v596_v8 = vld [vmem:[#allocation6 + $0x30] sm:$0xff] }
 0x139   :  { %v518_v18 = vpop.f32.mrf.mxu3 }
 0x13a   :  { %v530_v37 = vmul.f32 %v518_v18, %v196_v32  ;;  %v251_v18 = vperm.slane %v248_v14, 1  ;;  %v260_v32 = vperm.slane %v245_v12, 1 }
 0x13c   :  { %v257_v27 = vmul.f32 %v251_v18, %v1029_v25  ;;  %v270_v28 = vmul.f32 %v251_v18, %v1027_v21 }
 0x13e   :  { %v498_v29 = vpop.f32.mrf.mxu2 }
 0x13f   :  { %v529_v31 = vmul.f32 %v498_v29, %v197_v24  ;;  %v267_v24 = vmul.f32 %v250_v15, %v1025_v20  ;;  %v265_v29 = vadd.f32 %v259_v23, %v256_v16 }
 0x141   :  { %v521_v34 = vpop.f32.mrf.mxu3  ;;  %555 = vmatpush.msrb.mxu0 %v529_v31  ;;  %v255_v31 = vmul.f32 %v251_v18, %v1023_v19 }
 0x142   :  { %v531_v36 = vmul.f32 %v521_v34, %v198_v30  ;;  %v273_v30 = vadd.f32 %v269_v17, %v259_v23  ;;  %v263_v34 = vadd.f32 %v259_v23, %v254_v22 }
 0x143   :  { %556 = vmatpush.msrb.mxu0 %v528_v33  ;;  %v268_v33 = vmul.f32 %v251_v18, %v1025_v20  ;;  %v264_v40 = vadd.f32 %v260_v32, %v255_v31  ;;  %v327_v31 = vld [vmem:[#allocation3 + $0x17] ss:$8 sm:$0x3] }
 0x144   :  { %578 = vmatpush.msrb.mxu1 %v531_v36  ;;  %856 = vmatmul.msk.f32.vlgmr.msrb.gmra.mxu0 %vm408_vm0, %v533_v35  ;;  %v277_v39 = vmul.f32 %v273_v30, %v265_v29  ;;  %v723_v29 = vld [vmem:[#allocation6 + $0x58] sm:$0xff] }
 0x145   :  { %v272_v41 = vadd.f32 %v268_v33, %v260_v32  ;;  %v325_v30 = vld [vmem:[#allocation3 + $0x16] ss:$8 sm:$0x3] }
 0x146   :  { %579 = vmatpush.msrb.mxu1 %v530_v37  ;;  %v266_v37 = vadd.f32 %v260_v32, %v257_v27 }
 0x147   :  { %858 = vmatmul.msk.f32.vlgmr.msrb.gmra.mxu1 %vm408_vm0, %v533_v35  ;;  %v271_v35 = vadd.f32 %v267_v24, %v259_v23  ;;  %v276_v46 = vmul.f32 %v272_v41, %v264_v40 }
 0x149   :  { %v275_v42 = vmul.f32 %v271_v35, %v263_v34 }
 0x14c   :  { %857 = vmatmul.msk.f32.gmra.mxu0 %vm408_vm0, %v534_v38 }
 0x14f   :  { %859 = vmatmul.msk.f32.gmra.mxu1 %vm408_vm0, %v534_v38  ;;  %v274_v38 = vadd.f32 %v270_v28, %v260_v32  ;;  %v328_v32 = vsub.f32 %v327_v31, %v325_v30 }
 0x151   :  { %v278_v44 = vmul.f32 %v274_v38, %v266_v37  ;;  %v330_v33 = vperm.slane %v328_v32, 0  ;;  %v339_v38 = vperm.slane %v325_v30, 0 }
 0x153   :  { %v336_v34 = vmul.f32 %v330_v33, %v1029_v25  ;;  %v349_v35 = vmul.f32 %v330_v33, %v1027_v21  ;;  %v334_v37 = vmul.f32 %v330_v33, %v1023_v19 }
 0x1c1   :  { %v558_v49 = vpop.f32.mrf.mxu0 }
 0x1c2   :  { %v591_v6 = vmul.f32 %v558_v49, %v235_v1  ;;  %v659_v49 = vld [vmem:[#allocation6 + $0x40] sm:$0xff] }
 0x1c4   :  { %v581_v59 = vpop.f32.mrf.mxu1 }
 0x1c5   :  { %v593_v10 = vmul.f32 %v581_v59, %v236_v5  ;;  %v291_v59 = vperm.slane %v288_v55, 1  ;;  %v300_v5 = vperm.slane %v285_v53, 1 }
 0x1c7   :  { %v297_v0 = vmul.f32 %v291_v59, %v1029_v25  ;;  %v310_v1 = vmul.f32 %v291_v59, %v1027_v21 }
 0x1c9   :  { %v561_v2 = vpop.f32.mrf.mxu0 }
 0x1ca   :  { %v592_v4 = vmul.f32 %v561_v2, %v237_v62  ;;  %v307_v62 = vmul.f32 %v290_v56, %v1025_v20  ;;  %v305_v2 = vadd.f32 %v299_v61, %v296_v57 }
 0x1cc   :  { %v584_v7 = vpop.f32.mrf.mxu1  ;;  %618 = vmatpush.msrb.mxu2 %v592_v4  ;;  %v295_v4 = vmul.f32 %v291_v59, %v1023_v19 }
 0x1cd   :  { %v594_v9 = vmul.f32 %v584_v7, %v238_v3  ;;  %v313_v3 = vadd.f32 %v309_v58, %v299_v61  ;;  %v303_v7 = vadd.f32 %v299_v61, %v294_v60 }
 0x1ce   :  { %619 = vmatpush.msrb.mxu2 %v591_v6  ;;  %v308_v6 = vmul.f32 %v291_v59, %v1025_v20  ;;  %v304_v13 = vadd.f32 %v300_v5, %v295_v4 }
 0x1cf   :  { %641 = vmatpush.msrb.mxu3 %v594_v9  ;;  %860 = vmatmul.msk.f32.vlgmr.msrb.gmra.mxu2 %vm408_vm0, %v596_v8  ;;  %v317_v12 = vmul.f32 %v313_v3, %v305_v2 }
 0x1d0   :  { %v312_v14 = vadd.f32 %v308_v6, %v300_v5 }
 0x1d1   :  { %642 = vmatpush.msrb.mxu3 %v593_v10  ;;  %v306_v10 = vadd.f32 %v300_v5, %v297_v0 }
 0x1d2   :  { %862 = vmatmul.msk.f32.vlgmr.msrb.gmra.mxu3 %vm408_vm0, %v596_v8  ;;  %v311_v8 = vadd.f32 %v307_v62, %v299_v61  ;;  %v316_v22 = vmul.f32 %v312_v14, %v304_v13 }
 0x1d4   :  { %v315_v15 = vmul.f32 %v311_v8, %v303_v7 }
 0x1d7   :  { %861 = vmatmul.msk.f32.gmra.mxu2 %vm408_vm0, %v597_v11 }
 0x1da   :  { %863 = vmatmul.msk.f32.gmra.mxu3 %vm408_vm0, %v597_v11  ;;  %v314_v11 = vadd.f32 %v310_v1, %v300_v5 }
 0x1dc   :  { %v318_v17 = vmul.f32 %v314_v11, %v306_v10 }
 0x252   :  { %v621_v26 = vpop.f32.mrf.mxu2 }
 0x253   :  { %v654_v47 = vmul.f32 %v621_v26, %v275_v42  ;;  %v722_v26 = vld [vmem:[#allocation6 + $0x50] sm:$0xff] }
 0x255   :  { %v644_v36 = vpop.f32.mrf.mxu3 }
 0x256   :  { %v656_v51 = vmul.f32 %v644_v36, %v276_v46  ;;  %v331_v36 = vperm.slane %v328_v32, 1  ;;  %v340_v46 = vperm.slane %v325_v30, 1 }
 0x258   :  { %v337_v41 = vmul.f32 %v331_v36, %v1029_v25  ;;  %v350_v42 = vmul.f32 %v331_v36, %v1027_v21 }
 0x25a   :  { %v624_v43 = vpop.f32.mrf.mxu2 }
 0x25b   :  { %v655_v45 = vmul.f32 %v624_v43, %v277_v39  ;;  %v347_v39 = vmul.f32 %v330_v33, %v1025_v20  ;;  %v345_v43 = vadd.f32 %v339_v38, %v336_v34 }
 0x25d   :  { %v647_v48 = vpop.f32.mrf.mxu3  ;;  %681 = vmatpush.msra.mxu0 %v655_v45  ;;  %v335_v45 = vmul.f32 %v331_v36, %v1023_v19  ;;  %v784_v19 = vld [vmem:[#allocation8] sm:$0xff] }
 0x25e   :  { %v657_v50 = vmul.f32 %v647_v48, %v278_v44  ;;  %v353_v44 = vadd.f32 %v349_v35, %v339_v38  ;;  %v343_v48 = vadd.f32 %v339_v38, %v334_v37 }
 0x25f   :  { %682 = vmatpush.msra.mxu0 %v654_v47  ;;  %v348_v47 = vmul.f32 %v331_v36, %v1025_v20  ;;  %v344_v54 = vadd.f32 %v340_v46, %v335_v45 }
 0x260   :  { %704 = vmatpush.msra.mxu1 %v657_v50  ;;  %864 = vmatmul.msk.f32.vlgmr.msra.gmra.mxu0 %vm408_vm0, %v659_v49  ;;  %v357_v53 = vmul.f32 %v353_v44, %v345_v43 }
 0x261   :  { %v352_v55 = vadd.f32 %v348_v47, %v340_v46 }
 0x262   :  { %705 = vmatpush.msra.mxu1 %v656_v51  ;;  %v346_v51 = vadd.f32 %v340_v46, %v337_v41 }
 0x263   :  { %866 = vmatmul.msk.f32.vlgmr.msra.gmra.mxu1 %vm408_vm0, %v659_v49  ;;  %v351_v49 = vadd.f32 %v347_v39, %v339_v38  ;;  %v356_v21 = vmul.f32 %v352_v55, %v344_v54 }
 0x265   :  { %v355_v56 = vmul.f32 %v351_v49, %v343_v48 }
 0x268   :  { %865 = vmatmul.msk.f32.gmra.mxu0 %vm408_vm0, %v660_v52 }
 0x26b   :  { %867 = vmatmul.msk.f32.gmra.mxu1 %vm408_vm0, %v660_v52  ;;  %v354_v52 = vadd.f32 %v350_v42, %v340_v46 }
 0x26d   :  { %v358_v25 = vmul.f32 %v354_v52, %v346_v51 }
 0x2dd   :  { %v684_v63 = vpop.f32.mrf.mxu0 }
 0x2de   :  { %v717_v23 = vmul.f32 %v684_v63, %v315_v15 }
 0x2e0   :  { %v707_v9 = vpop.f32.mrf.mxu1 }
 0x2e1   :  { %v719_v28 = vmul.f32 %v707_v9, %v316_v22 }
 0x2e5   :  { %v687_v16 = vpop.f32.mrf.mxu0 }
 0x2e6   :  { %v718_v18 = vmul.f32 %v687_v16, %v317_v12 }
 0x2e8   :  { %v710_v24 = vpop.f32.mrf.mxu1  ;;  %744 = vmatpush.msra.mxu2 %v718_v18 }
 0x2e9   :  { %v720_v27 = vmul.f32 %v710_v24, %v318_v17 }
 0x2ea   :  { %745 = vmatpush.msra.mxu2 %v717_v23 }
 0x2eb   :  { %767 = vmatpush.msra.mxu3 %v720_v27  ;;  %868 = vmatmul.msk.f32.vlgmr.msra.gmra.mxu2 %vm408_vm0, %v722_v26 }
 0x2ed   :  { %768 = vmatpush.msra.mxu3 %v719_v28 }
 0x2ee   :  { %870 = vmatmul.msk.f32.vlgmr.msra.gmra.mxu3 %vm408_vm0, %v722_v26 }
 0x2f3   :  { %869 = vmatmul.msk.f32.gmra.mxu2 %vm408_vm0, %v723_v29 }
 0x2f6   :  { %871 = vmatmul.msk.f32.gmra.mxu3 %vm408_vm0, %v723_v29 }
 0x36e   :  { %v747_v40 = vpop.f32.mrf.mxu2 }
 0x36f   :  { %v780_v59 = vmul.f32 %v747_v40, %v355_v56 }
 0x371   :  { %v770_v50 = vpop.f32.mrf.mxu3 }
 0x372   :  { %v782_v20 = vmul.f32 %v770_v50, %v356_v21 }
 0x376   :  { %v750_v57 = vpop.f32.mrf.mxu2 }
 0x377   :  { %v781_v58 = vmul.f32 %v750_v57, %v357_v53 }
 0x379   :  { %v773_v60 = vpop.f32.mrf.mxu3  ;;  %802 = vmatpush.msrb.mxu0 %v781_v58 }
 0x37a   :  { %v783_v61 = vmul.f32 %v773_v60, %v358_v25 }
 0x37b   :  { %803 = vmatpush.msrb.mxu0 %v780_v59 }
 0x37c   :  { %823 = vmatpush.msrb.mxu1 %v783_v61  ;;  %872 = vmatmul.msk.f32.vlgmr.msrb.gmra.mxu0 %vm408_vm0, %v784_v19 }
 0x37e   :  { %824 = vmatpush.msrb.mxu1 %v782_v20 }
 0x37f   :  { %873 = vmatmul.msk.f32.vlgmr.msrb.gmra.mxu1 %vm408_vm0, %v784_v19 }
 0x3f9   :  { %v805_v62 = vpop.f32.mrf.mxu0 }
 0x3fa   :  { %808 = vst [vmem:[#allocation9] sm:$0xff] %v805_v62 }
 0x3fc   :  { %v826_v63 = vpop.f32.mrf.mxu1 }
 0x3fd   :  { %829 = vst [vmem:[#allocation9 + $0x8] sm:$0xff] %v826_v63 }
 0x3fe   :  { %840 = dma.vmem_to_hbm [thread:$0]  %s836_s2, 256, %s838_s5, [#allocation5]  }
 0x3ff   :  { %982 = dma.done.wait [#allocation5], 256  }
 0x400   :  { %983 = vsyncadd [#allocation5], 4294967040 }
 0x401   :  { %845 = vsyncpa [#allocation4], 1 }
 0x402   :  { %846 = vsyncpa [#allocation7], 1 }
 0x403   :  { %847 = vsyncpa [#allocation5], 1 }

</bundles_post_ra>
